<compile_context>
chip_gen: v7x
topology: tpu7x:2x2x1
jax: 0.10.0
libtpu: 0.0.40
codegen_flags: <defaults>
</compile_context>

<pallas_src>
import functools

import jax
import jax.numpy as jnp
from jax.experimental import pallas as pl
from jax.experimental.pallas import tpu as pltpu

LANES = 128
SUBLANES = 8
GROUP_ROWS = 64          # rows folded per fori_loop iteration (8 f32 vregs / input)
MAX_TILE_ROWS = 4096     # (4096, 128) f32 block = 2 MiB per input stream
TARGET_BLOCKS = 4        # keep >= ~4 grid steps so multi-TC chips can split the work


def _round_up(x, m):
    return ((x + m - 1) // m) * m


def _cdiv(a, b):
    return (a + b - 1) // b


def _isloss_kernel(pred_ref, targ_ref, lw_ref, out_ref, *, group_rows, rows_k, ragged):
    """One grid step: lane/sublane-parallel partial sums for one row block.

    out_ref view: (1, 3, 8, 128) float32
      [0] partial sum of (pred - target)^2
      [1] partial sum of exp(-log_weight)
      [2] partial sum of log_weight
    """
    tile_rows = pred_ref.shape[0]
    num_groups = tile_rows // group_rows        # static
    folds = group_rows // SUBLANES              # static

    if ragged:
        # Only emitted when the grid overshoots rows_k.  Validity is at group
        # granularity (rows_k and tile_rows are both multiples of group_rows),
        # so one scalar compare + 3 vreg selects per 64-row group suffice.
        valid_groups = (rows_k - pl.program_id(0) * tile_rows) // group_rows

    def fold(x):
        # (group_rows, 128) -> (8, 128) with pure vreg adds (no XLU work).
        if folds == 1:
            return x
        return jnp.sum(x.reshape(folds, SUBLANES, LANES), axis=0)

    def body(g, carry):
        s_d2, s_e, s_lw = carry
        start = pl.multiple_of(g * group_rows, group_rows)
        # Cast after the load: free VPU work hidden under DMA (no-op for f32).
        p = pred_ref[pl.ds(start, group_rows), :].astype(jnp.float32)
        t = targ_ref[pl.ds(start, group_rows), :].astype(jnp.float32)
        lw = lw_ref[pl.ds(start, group_rows), :].astype(jnp.float32)
        d = p - t
        d2 = fold(d * d)
        e = fold(jnp.exp(-lw))
        lws = fold(lw)
        if ragged:
            # Garbage (possibly Inf/NaN) from out-of-range rows is discarded by
            # the select, which is safe under TPU select semantics.
            ok = g < valid_groups
            d2 = jnp.where(ok, d2, 0.0)
            e = jnp.where(ok, e, 0.0)
            lws = jnp.where(ok, lws, 0.0)
        return (s_d2 + d2, s_e + e, s_lw + lws)

    zero = jnp.zeros((SUBLANES, LANES), jnp.float32)
    s_d2, s_e, s_lw = jax.lax.fori_loop(
        0, num_groups, body, (zero, zero, zero), unroll=min(2, num_groups))

    out_ref[0, 0] = s_d2
    out_ref[0, 1] = s_e
    out_ref[0, 2] = s_lw


@functools.partial(jax.jit, static_argnames=("reduction",))
def isloss(pred, target, log_weight, reduction="mean"):
    """JAX/Pallas equivalent of ISLoss.forward(source, target, weight)."""
    assert pred.shape == target.shape == log_weight.shape
    n = pred.size
    f32 = jnp.float32

    flat = [x.reshape(-1) for x in (pred, target, log_weight)]

    rows_floor = n // LANES
    group_rows = GROUP_ROWS if rows_floor >= GROUP_ROWS else SUBLANES
    rows_k = (rows_floor // group_rows) * group_rows   # rows covered by the kernel
    k0 = rows_k * LANES                                # elements covered by the kernel

    sum_sq = jnp.float32(0.0)
    sum_expneg = jnp.float32(0.0)
    sum_lw = jnp.float32(0.0)

    if rows_k > 0:
        if n % LANES == 0:
            rows_total = rows_floor
            mats = [x.reshape(rows_total, LANES) for x in flat]      # zero-copy view
        else:
            # TODO(synk): rare ragged case (n not a multiple of 128) pays one extra
            # HBM copy via jnp.pad; the padded elements lie past rows_k and are
            # never counted by the kernel (they belong to the plain-JAX tail below).
            padded_n = _round_up(n, LANES)
            rows_total = padded_n // LANES
            mats = [jnp.pad(x, (0, padded_n - n)).reshape(rows_total, LANES)
                    for x in flat]

        # Block size: as big as possible (2 MiB/input) but keep >= TARGET_BLOCKS
        # grid steps so multi-TensorCore chips shard the parallel axis.
        tile_rows = min(
            MAX_TILE_ROWS,
            max(group_rows, _round_up(_cdiv(rows_k, TARGET_BLOCKS), group_rows)),
        )
        nb = _cdiv(rows_k, tile_rows)
        ragged = (nb * tile_rows) != rows_k

        in_spec = pl.BlockSpec((tile_rows, LANES), lambda i: (i, 0))
        out_spec = pl.BlockSpec((1, 3, SUBLANES, LANES), lambda i: (i, 0, 0, 0))

        kernel = functools.partial(
            _isloss_kernel, group_rows=group_rows, rows_k=rows_k, ragged=ragged)

        itemsize = jnp.dtype(pred.dtype).itemsize
        cost = pl.CostEstimate(
            flops=6 * k0,
            transcendentals=k0,
            bytes_accessed=3 * k0 * itemsize + nb * 3 * SUBLANES * LANES * 4,
        )

        partials = pl.pallas_call(
            kernel,
            out_shape=jax.ShapeDtypeStruct((nb, 3, SUBLANES, LANES), jnp.float32),
            grid_spec=pltpu.PrefetchScalarGridSpec(
                num_scalar_prefetch=0,
                grid=(nb,),
                in_specs=[in_spec, in_spec, in_spec],
                out_specs=out_spec,
            ),
            compiler_params=pltpu.CompilerParams(
                dimension_semantics=("parallel",),
                vmem_limit_bytes=32 * 1024 * 1024,
            ),
            cost_estimate=cost,
        )(*mats)

        # Tiny final reduction in plain JAX.
        sums = jnp.sum(partials, axis=(0, 2, 3))     # (3,)
        sum_sq = sums[0]
        sum_expneg = sums[1]
        sum_lw = sums[2]

    # Ragged tail (< group_rows*128 + 128 elements): tiny plain-JAX pass on the
    # ORIGINAL (unpadded) arrays, so total HBM traffic stays at ~one read/input.
    if k0 < n:
        tp = flat[0][k0:].astype(f32)
        tt = flat[1][k0:].astype(f32)
        tl = flat[2][k0:].astype(f32)
        td = tp - tt
        sum_sq = sum_sq + jnp.sum(td * td)
        sum_expneg = sum_expneg + jnp.sum(jnp.exp(-tl))
        sum_lw = sum_lw + jnp.sum(tl)

    n_f = jnp.float32(n)
    mse = sum_sq / n_f                                # F.mse_loss(pred, target)

    if reduction == "mean":
        # mean(exp(-lw) * mse + lw) = (sum(exp(-lw)) * mse + sum(lw)) / n
        return (sum_expneg * mse + sum_lw) / n_f
    # TODO(synk): reduction != 'mean' returns the per-element tensor; this path is
    # a second plain-JAX elementwise pass (not fused into the kernel).
    lw_full = log_weight.astype(f32)
    return jnp.exp(-lw_full) * mse + lw_full


def _isloss_ref(pred, target, log_weight):
    """Pure-JAX reference matching the PyTorch module."""
    weight = jnp.exp(-log_weight)
    mse = jnp.mean((pred - target) ** 2)
    return jnp.mean(weight * mse + log_weight)


if __name__ == "__main__":
    key = jax.random.PRNGKey(0)

    shapes = [
        (2, 4, 16, 16),    # primary NCHW shape; aligned, multi-block grid
        (2, 4, 64, 80),    # ragged grid -> group-masked last block
        (2, 4, 144, 128),  # multiple 64-row groups per block, ragged grid
        (3, 5, 9, 31),     # n not a multiple of 128 -> pad + plain-JAX tail
        (1, 1, 200, 205),  # ragged grid + pad + tail together
    ]

    for shape in shapes:
        key, k1, k2, k3 = jax.random.split(key, 4)
        pred = jax.random.normal(k1, shape, dtype=jnp.float32)
        target = jax.random.normal(k2, shape, dtype=jnp.float32)
        log_weight = 0.1 * jax.random.normal(k3, shape, dtype=jnp.float32)

        loss = jax.block_until_ready(isloss(pred, target, log_weight))
        ref = _isloss_ref(pred, target, log_weight)
        assert jnp.allclose(loss, ref, rtol=1e-5, atol=1e-5), (shape, loss, ref)

    print("KERNEL_OK")
</pallas_src>

<mosaic_0001>
module attributes {stable_mosaic.version = 11 : i64} {
  func.func @_isloss_kernel(%arg0: i32, %arg1: memref<8x128xf32, #tpu.memory_space<vmem>>, %arg2: memref<8x128xf32, #tpu.memory_space<vmem>>, %arg3: memref<8x128xf32, #tpu.memory_space<vmem>>, %arg4: memref<1x3x8x128xf32, #tpu.memory_space<vmem>>) attributes {dimension_semantics = [#tpu.dimension_semantics<parallel>], iteration_bounds = array<i64: 2>, scalar_prefetch = 0 : i64, scratch_operands = 0 : i64, tpu.core_type = #tpu.core_type<tc>, window_params = [{transform_indices = @transform_0, window_bounds = array<i64: 8, 128>}, {transform_indices = @transform_1, window_bounds = array<i64: 8, 128>}, {transform_indices = @transform_2, window_bounds = array<i64: 8, 128>}, {transform_indices = @transform_3, window_bounds = array<i64: 1, 3, 8, 128>}]} {
    %cst = arith.constant 0.000000e+00 : f32
    %0 = vector.broadcast %cst : f32 to vector<8x128xf32>
    %c0_i32 = arith.constant 0 : i32
    %c8_i32 = arith.constant 8 : i32
    %1 = arith.muli %c0_i32, %c8_i32 : i32
    %2 = tpu.assume_multiple %1, 8 : i32
    %3 = arith.index_cast %2 : i32 to index
    %c0 = arith.constant 0 : index
    %4 = vector.load %arg1[%3, %c0] : memref<8x128xf32, #tpu.memory_space<vmem>>, vector<8x128xf32>
    %5 = arith.index_cast %2 : i32 to index
    %c0_0 = arith.constant 0 : index
    %6 = vector.load %arg2[%5, %c0_0] : memref<8x128xf32, #tpu.memory_space<vmem>>, vector<8x128xf32>
    %7 = arith.index_cast %2 : i32 to index
    %c0_1 = arith.constant 0 : index
    %8 = vector.load %arg3[%7, %c0_1] : memref<8x128xf32, #tpu.memory_space<vmem>>, vector<8x128xf32>
    %9 = arith.subf %4, %6 : vector<8x128xf32>
    %10 = arith.mulf %9, %9 : vector<8x128xf32>
    %cst_2 = arith.constant 0.000000e+00 : f32
    %11 = vector.broadcast %cst_2 : f32 to vector<8x128xf32>
    %12 = arith.subf %11, %8 : vector<8x128xf32>
    %13 = math.exp %12 : vector<8x128xf32>
    %14 = arith.addf %0, %10 : vector<8x128xf32>
    %15 = arith.addf %0, %13 : vector<8x128xf32>
    %16 = arith.addf %0, %8 : vector<8x128xf32>
    %c1_i32 = arith.constant 1 : i32
    %c0_3 = arith.constant 0 : index
    %c0_4 = arith.constant 0 : index
    %c0_5 = arith.constant 0 : index
    %c0_6 = arith.constant 0 : index
    %17 = vector.load %arg4[%c0_3, %c0_4, %c0_5, %c0_6] : memref<1x3x8x128xf32, #tpu.memory_space<vmem>>, vector<1x1x8x128xf32>
    %18 = vector.shape_cast %17 : vector<1x1x8x128xf32> to vector<8x128xf32>
    %19 = vector.shape_cast %14 : vector<8x128xf32> to vector<1x1x8x128xf32>
    tpu.vector_store %arg4[%c0_3, %c0_4, %c0_5, %c0_6], %19 {strides = array<i32>} : memref<1x3x8x128xf32, #tpu.memory_space<vmem>>, vector<1x1x8x128xf32>,
    %c0_7 = arith.constant 0 : index
    %c1 = arith.constant 1 : index
    %c0_8 = arith.constant 0 : index
    %c0_9 = arith.constant 0 : index
    %20 = vector.load %arg4[%c0_7, %c1, %c0_8, %c0_9] : memref<1x3x8x128xf32, #tpu.memory_space<vmem>>, vector<1x1x8x128xf32>
    %21 = vector.shape_cast %20 : vector<1x1x8x128xf32> to vector<8x128xf32>
    %22 = vector.shape_cast %15 : vector<8x128xf32> to vector<1x1x8x128xf32>
    tpu.vector_store %arg4[%c0_7, %c1, %c0_8, %c0_9], %22 {strides = array<i32>} : memref<1x3x8x128xf32, #tpu.memory_space<vmem>>, vector<1x1x8x128xf32>,
    %c0_10 = arith.constant 0 : index
    %c2 = arith.constant 2 : index
    %c0_11 = arith.constant 0 : index
    %c0_12 = arith.constant 0 : index
    %23 = vector.load %arg4[%c0_10, %c2, %c0_11, %c0_12] : memref<1x3x8x128xf32, #tpu.memory_space<vmem>>, vector<1x1x8x128xf32>
    %24 = vector.shape_cast %23 : vector<1x1x8x128xf32> to vector<8x128xf32>
    %25 = vector.shape_cast %16 : vector<8x128xf32> to vector<1x1x8x128xf32>
    tpu.vector_store %arg4[%c0_10, %c2, %c0_11, %c0_12], %25 {strides = array<i32>} : memref<1x3x8x128xf32, #tpu.memory_space<vmem>>, vector<1x1x8x128xf32>,
    return
  }
  func.func @transform_0(%arg0: i32) -> (i32, i32) {
    %c0_i32 = arith.constant 0 : i32
    %c0_i32_0 = arith.constant 0 : i32
    return %arg0, %c0_i32 : i32, i32
  }
  func.func @transform_1(%arg0: i32) -> (i32, i32) {
    %c0_i32 = arith.constant 0 : i32
    %c0_i32_0 = arith.constant 0 : i32
    return %arg0, %c0_i32 : i32, i32
  }
  func.func @transform_2(%arg0: i32) -> (i32, i32) {
    %c0_i32 = arith.constant 0 : i32
    %c0_i32_0 = arith.constant 0 : i32
    return %arg0, %c0_i32 : i32, i32
  }
  func.func @transform_3(%arg0: i32) -> (i32, i32, i32, i32) {
    %c0_i32 = arith.constant 0 : i32
    %c0_i32_0 = arith.constant 0 : i32
    %c0_i32_1 = arith.constant 0 : i32
    %c0_i32_2 = arith.constant 0 : i32
    return %arg0, %c0_i32, %c0_i32_0, %c0_i32_1 : i32, i32, i32, i32
  }
}

</mosaic_0001>

<bundles_post_ra>
// kernel: isloss.1
= control target key start
LH: loop header
LB: loop body
LE: loop exit
PB: predicated region body
PF: predicated region fallthrough
CT: control target
= control target key end

     0   :  { %s349_s12 = smov 0   ;;  %s372_s0 = inlined_call_operand.vmem [shape: f32[16,128], index: 0, kind: input, shape index: {}]   ;;  %s373_s1 = inlined_call_operand.vmem [shape: f32[16,128], index: 1, kind: input, shape index: {}]   ;;  %s374_s2 = inlined_call_operand.vmem [shape: f32[16,128], index: 2, kind: input, shape index: {}]   ;;  %s375_s3 = inlined_call_operand.vmem [shape: f32[2,3,8,128], index: 3, kind: output, shape index: {}]  }
   0x1 LB: > { %s297_s13 = sadd.s32 4294967295, %s327_s12   ;;  %p301_p0 = scmp.ge.s32.totalorder %s327_s12, 1  ;;  %s327_s12 = sphi %s349_s12, %s13_s12  }
   0x2   : > { %p154_p1 = scmp.lt.s32.totalorder %s327_s12, 3 }
   0x4   : > { %p155_p2 = pnand %p301_p0, %p154_p1 }
   0x5   : > { %p185_p3 = scmp.lt.s32.totalorder (!%p155_p2), %s297_s13, 1 }
   0x6   : > { %158 = sbr.rel (%p155_p2) target bundleno = 35 (0x23), region = 32 }
   0xd   : > { %s377_s13 = smov (!%p185_p3, %s297_s13), 1 }
   0xe   : > { %s302_s14 = sshll.u32 %s377_s13, 3  ;;  %s310_s15 = smul.u32 24, %s377_s13 }
   0xf   : > { %s188_s18 = scalar_lea.vmem %s372_s0, %s302_s14  ;;  %s192_s21 = scalar_lea.vmem %s373_s1, %s302_s14 }
  0x10   : > { %s196_s24 = scalar_lea.vmem %s374_s2, %s302_s14  ;;  %s201_s27 = scalar_lea.vmem %s375_s3, %s310_s15  ;;  %v202_v0 = vld [vmem:[%s188_s18] sm:$0xff] }
  0x11   : > { %v203_v1 = vld [vmem:[%s192_s21] sm:$0xff] }
  0x12   : > { %v204_v2 = vld [vmem:[%s196_s24] sm:$0xff]  ;;  %v205_v3 = vsub.f32 %v202_v0, %v203_v1 }
  0x13   : > { %v207_v4 = vsub.f32 0.0, %v204_v2  ;;  %307 = vst [vmem:[%s201_s27 + $0x10] sm:$0xff] %v204_v2 }
  0x14   : > { %v206_v5 = vmul.f32 %v205_v3, %v205_v3 }
  0x15   : > { %v208_v6 = vmul.f32 1.442695, %v207_v4 }
  0x16   : > { %213 = vst [vmem:[%s201_s27] sm:$0xff] %v206_v5 }
  0x17   : > { %319 = vpow2.f32 %v208_v6 }
  0x21   : > { %v320_v7 = vpop.eup %319 }
  0x22   : > { %306 = vst [vmem:[%s201_s27 + $0x8] sm:$0xff] %v320_v7 }
  0x23 PF: > { %s13_s12 = sadd.s32 1, %s327_s12  }
  0x24   : > { %p10_p4 = scmp.ge.s32.totalorder %s13_s12, 4  }
  0x26   :  { %12 = sbr.rel (!%p10_p4) target bundleno = 1 (0x1), region = 70 }

</bundles_post_ra>
